<compile_context>
chip_gen: v5e
topology: v5e:2x2
jax: 0.10.0
libtpu: 0.0.40
codegen_flags: <defaults>
</compile_context>

<pallas_src>
import jax
import jax.numpy as jnp
from jax.experimental import pallas as pl
from jax.experimental.pallas import tpu as pltpu


def planar_flow_kernel(z_ref, u_ref, w_ref, b_ref, fz_ref, ld_ref):
    z = z_ref[...].astype(jnp.float32)       # (TB, D)
    u = u_ref[...].astype(jnp.float32)       # (1, D)
    w = w_ref[...].astype(jnp.float32)       # (1, D)
    b = b_ref[0]                             # scalar, from SMEM

    # O(D) parameter prep (cheap; recomputed per tile).
    uw = jnp.sum(u * w)                                  # <u, w>
    muw = -1.0 + jax.nn.softplus(uw)
    uhat = u + (muw - uw) * w / jnp.sum(w * w)           # (1, D)
    wuhat = jnp.sum(w * uhat)                            # == muw up to rounding

    # zwb = z @ w + b  (per-row reduction over D)
    zwb = jnp.sum(z * w, axis=-1, keepdims=True) + b     # (TB, 1)
    t = jnp.tanh(zwb)                                    # (TB, 1)

    # f_z = z + uhat * tanh(zwb)
    fz_ref[...] = (z + uhat * t).astype(fz_ref.dtype)

    # psi_u = <(1 - t^2) * w, uhat> = (1 - t^2) * <w, uhat>   (exact algebra;
    # drops the (TB, D) psi intermediate and its per-row XLU reduction).
    psi_u = (1.0 - t * t) * wuhat                        # (TB, 1)
    ld_ref[...] = jnp.log(jnp.abs(1.0 + psi_u) + 1e-8).astype(ld_ref.dtype)


def _round_up(x, m):
    return ((x + m - 1) // m) * m


def planar_flow(z, u, w, b, *, block_batch=None):
    """Planar flow forward. z: (B, D); u, w: (D,); b: (1,). Returns (f_z, logdet)."""
    B, D = z.shape

    if block_batch is None:
        # Largest batch tile whose f32 z-block stays ~2 MiB: keeps the
        # double-buffered pipeline comfortably inside v7x's 64 MiB VMEM.
        block_batch = max(8, min(B, (2 * 1024 * 1024) // (D * 4), 1024))
    tb = _round_up(max(1, min(block_batch, B)), 8)       # sublane-aligned tile
    grid = (pl.cdiv(B, tb),)

    # Scoped-VMEM budget: double-buffered z / f_z / logdet tiles + params + slack.
    per_block = tb * D * 4
    needed = 2 * (2 * per_block + tb * 4) + 2 * D * 4 + (2 << 20)
    vmem_limit = int(min(max(needed, 8 << 20), 100 << 20))

    fz, ld = pl.pallas_call(
        planar_flow_kernel,
        out_shape=(
            jax.ShapeDtypeStruct((B, D), z.dtype),
            jax.ShapeDtypeStruct((B, 1), jnp.float32),
        ),
        grid_spec=pltpu.PrefetchScalarGridSpec(
            num_scalar_prefetch=0,
            grid=grid,
            in_specs=[
                pl.BlockSpec((tb, D), lambda i: (i, 0)),            # z tile
                pl.BlockSpec((1, D), lambda i: (0, 0)),             # u (broadcast)
                pl.BlockSpec((1, D), lambda i: (0, 0)),             # w (broadcast)
                pl.BlockSpec(memory_space=pltpu.MemorySpace.SMEM),  # b scalar
            ],
            out_specs=(
                pl.BlockSpec((tb, D), lambda i: (i, 0)),            # f_z tile
                pl.BlockSpec((tb, 1), lambda i: (i, 0)),            # logdet tile
            ),
        ),
        compiler_params=pltpu.CompilerParams(
            dimension_semantics=("parallel",),
            vmem_limit_bytes=vmem_limit,
        ),
    )(z, u.reshape(1, D), w.reshape(1, D), jnp.asarray(b, jnp.float32).reshape(1))
    return fz, ld[:, 0]


def planar_flow_ref(z, u, w, b):
    """Pure-JAX reference mirroring the PyTorch forward exactly."""
    uw = jnp.dot(u, w)
    muw = -1.0 + jax.nn.softplus(uw)
    uhat = u + (muw - uw) * w / jnp.sum(w ** 2)
    zwb = z @ w + b
    f_z = z + uhat[None, :] * jnp.tanh(zwb)[:, None]
    psi = (1.0 - jnp.tanh(zwb) ** 2)[:, None] * w[None, :]
    psi_u = psi @ uhat
    logdet = jnp.log(jnp.abs(1.0 + psi_u) + 1e-8)
    return f_z, logdet


def _check(z, u, w, b, block_batch):
    f_z, logdet = planar_flow(z, u, w, b, block_batch=block_batch)
    f_z = jax.block_until_ready(f_z)
    logdet = jax.block_until_ready(logdet)
    f_z_ref, logdet_ref = planar_flow_ref(z, u, w, b)
    assert f_z.shape == z.shape and logdet.shape == (z.shape[0],)
    assert jnp.allclose(f_z, f_z_ref, atol=1e-5, rtol=1e-5)
    # log(|1 + psi_u| + 1e-8) amplifies last-ulp float differences when
    # |1 + psi_u| is small, so the determinant is compared in the linear
    # domain (the psi_u simplification is exact algebra; only rounding differs)
    # plus a loose log-domain bound.
    assert jnp.allclose(jnp.exp(logdet), jnp.exp(logdet_ref), rtol=1e-4, atol=1e-5)
    assert jnp.allclose(logdet, logdet_ref, atol=5e-3, rtol=1e-3)


if __name__ == "__main__":
    D = 32  # in_features

    key = jax.random.PRNGKey(0)
    k_u, k_w, k_z = jax.random.split(key, 3)

    # Deterministic "torch.randn"-style parameter init (synthetic, not a checkpoint).
    u = jax.random.normal(k_u, (D,), dtype=jnp.float32)
    w = jax.random.normal(k_w, (D,), dtype=jnp.float32)
    b = jnp.ones((1,), dtype=jnp.float32)

    # Multi-tile case: 4 pipelined grid steps over the batch (parallel axis).
    z = jax.random.normal(k_z, (256, D), dtype=jnp.float32)
    _check(z, u, w, b, block_batch=64)

    # Ragged case: batch not a multiple of the tile (partial last block masked).
    _check(z[:20], u, w, b, block_batch=8)

    print("KERNEL_OK")
</pallas_src>

<mosaic_0001>
module attributes {stable_mosaic.version = 11 : i64} {
  func.func @planar_flow_kernel(%arg0: i32, %arg1: memref<64x32xf32, #tpu.memory_space<vmem>>, %arg2: memref<1x32xf32, #tpu.memory_space<vmem>>, %arg3: memref<1x32xf32, #tpu.memory_space<vmem>>, %arg4: memref<1xf32, #tpu.memory_space<smem>>, %arg5: memref<64x32xf32, #tpu.memory_space<vmem>>, %arg6: memref<64x1xf32, #tpu.memory_space<vmem>>) attributes {dimension_semantics = [#tpu.dimension_semantics<parallel>], iteration_bounds = array<i64: 4>, scalar_prefetch = 0 : i64, scratch_operands = 0 : i64, tpu.core_type = #tpu.core_type<tc>, window_params = [{transform_indices = @transform_0, window_bounds = array<i64: 64, 32>}, {pipeline_mode = #tpu.pipeline_mode<synchronous>, transform_indices = @transform_1, window_bounds = array<i64: 1, 32>}, {pipeline_mode = #tpu.pipeline_mode<synchronous>, transform_indices = @transform_2, window_bounds = array<i64: 1, 32>}, {transform_indices = @transform_3, window_bounds = array<i64: 1>}, {transform_indices = @transform_4, window_bounds = array<i64: 64, 32>}, {transform_indices = @transform_5, window_bounds = array<i64: 64, 1>}]} {
    %c0 = arith.constant 0 : index
    %c0_0 = arith.constant 0 : index
    %0 = vector.load %arg1[%c0, %c0_0] : memref<64x32xf32, #tpu.memory_space<vmem>>, vector<64x32xf32>
    %c0_1 = arith.constant 0 : index
    %c0_2 = arith.constant 0 : index
    %1 = vector.load %arg2[%c0_1, %c0_2] : memref<1x32xf32, #tpu.memory_space<vmem>>, vector<1x32xf32>
    %c0_3 = arith.constant 0 : index
    %c0_4 = arith.constant 0 : index
    %2 = vector.load %arg3[%c0_3, %c0_4] : memref<1x32xf32, #tpu.memory_space<vmem>>, vector<1x32xf32>
    %c0_5 = arith.constant 0 : index
    %3 = memref.load %arg4[%c0_5] : memref<1xf32, #tpu.memory_space<smem>>
    %4 = arith.mulf %1, %2 : vector<1x32xf32>
    %5 = vector.shape_cast %4 : vector<1x32xf32> to vector<1x1x32xf32>
    %cst = arith.constant dense<0.000000e+00> : vector<1xf32>
    %6 = vector.multi_reduction <add>, %5, %cst [1, 2] : vector<1x1x32xf32> to vector<1xf32>
    %7 = vector.shape_cast %6 : vector<1xf32> to vector<1x1x1xf32>
    %8 = vector.extract %7[0, 0, 0] : f32 from vector<1x1x1xf32>
    %cst_6 = arith.constant 0.000000e+00 : f32
    %9 = arith.maximumf %8, %cst_6 : f32
    %10 = arith.subf %8, %cst_6 : f32
    %11 = arith.cmpf one, %10, %10 : f32
    %12 = arith.addf %8, %cst_6 : f32
    %13 = math.absf %10 : f32
    %cst_7 = arith.constant 0.000000e+00 : f32
    %14 = arith.subf %cst_7, %13 : f32
    %15 = math.exp %14 : f32
    %16 = math.log1p %15 : f32
    %17 = arith.addf %9, %16 : f32
    %18 = arith.select %11, %12, %17 : f32
    %cst_8 = arith.constant -1.000000e+00 : f32
    %19 = arith.addf %cst_8, %18 : f32
    %20 = arith.subf %19, %8 : f32
    %21 = vector.broadcast %20 : f32 to vector<1x32xf32>
    %22 = arith.mulf %21, %2 : vector<1x32xf32>
    %23 = arith.mulf %2, %2 : vector<1x32xf32>
    %24 = vector.shape_cast %23 : vector<1x32xf32> to vector<1x1x32xf32>
    %cst_9 = arith.constant dense<0.000000e+00> : vector<1xf32>
    %25 = vector.multi_reduction <add>, %24, %cst_9 [1, 2] : vector<1x1x32xf32> to vector<1xf32>
    %26 = vector.shape_cast %25 : vector<1xf32> to vector<1x1x1xf32>
    %27 = vector.extract %26[0, 0, 0] : f32 from vector<1x1x1xf32>
    %28 = vector.broadcast %27 : f32 to vector<1x32xf32>
    %29 = arith.divf %22, %28 : vector<1x32xf32>
    %30 = arith.addf %1, %29 : vector<1x32xf32>
    %31 = arith.mulf %2, %30 : vector<1x32xf32>
    %32 = vector.shape_cast %31 : vector<1x32xf32> to vector<1x1x32xf32>
    %cst_10 = arith.constant dense<0.000000e+00> : vector<1xf32>
    %33 = vector.multi_reduction <add>, %32, %cst_10 [1, 2] : vector<1x1x32xf32> to vector<1xf32>
    %34 = vector.shape_cast %33 : vector<1xf32> to vector<1x1x1xf32>
    %35 = vector.extract %34[0, 0, 0] : f32 from vector<1x1x1xf32>
    %36 = vector.broadcast %2 : vector<1x32xf32> to vector<64x32xf32>
    %37 = arith.mulf %0, %36 : vector<64x32xf32>
    %cst_11 = arith.constant dense<0.000000e+00> : vector<64xf32>
    %38 = vector.multi_reduction <add>, %37, %cst_11 [1] : vector<64x32xf32> to vector<64xf32>
    %39 = vector.shape_cast %38 : vector<64xf32> to vector<64x1xf32>
    %40 = vector.broadcast %3 : f32 to vector<64x1xf32>
    %41 = arith.addf %39, %40 : vector<64x1xf32>
    %42 = math.tanh %41 : vector<64x1xf32>
    %43 = vector.broadcast %30 : vector<1x32xf32> to vector<64x32xf32>
    %44 = vector.broadcast %42 : vector<64x1xf32> to vector<64x32xf32>
    %45 = arith.mulf %43, %44 : vector<64x32xf32>
    %46 = arith.addf %0, %45 : vector<64x32xf32>
    %c0_12 = arith.constant 0 : index
    %c0_13 = arith.constant 0 : index
    %47 = vector.load %arg5[%c0_12, %c0_13] : memref<64x32xf32, #tpu.memory_space<vmem>>, vector<64x32xf32>
    tpu.vector_store %arg5[%c0_12, %c0_13], %46 {strides = array<i32>} : memref<64x32xf32, #tpu.memory_space<vmem>>, vector<64x32xf32>,
    %48 = arith.mulf %42, %42 : vector<64x1xf32>
    %cst_14 = arith.constant 1.000000e+00 : f32
    %49 = vector.broadcast %cst_14 : f32 to vector<64x1xf32>
    %50 = arith.subf %49, %48 : vector<64x1xf32>
    %51 = vector.broadcast %35 : f32 to vector<64x1xf32>
    %52 = arith.mulf %50, %51 : vector<64x1xf32>
    %cst_15 = arith.constant 1.000000e+00 : f32
    %53 = vector.broadcast %cst_15 : f32 to vector<64x1xf32>
    %54 = arith.addf %53, %52 : vector<64x1xf32>
    %55 = math.absf %54 : vector<64x1xf32>
    %cst_16 = arith.constant 9.99999993E-9 : f32
    %56 = vector.broadcast %cst_16 : f32 to vector<64x1xf32>
    %57 = arith.addf %55, %56 : vector<64x1xf32>
    %58 = math.log %57 : vector<64x1xf32>
    %c0_17 = arith.constant 0 : index
    %c0_18 = arith.constant 0 : index
    %59 = vector.load %arg6[%c0_17, %c0_18] : memref<64x1xf32, #tpu.memory_space<vmem>>, vector<64x1xf32>
    tpu.vector_store %arg6[%c0_17, %c0_18], %58 {strides = array<i32>} : memref<64x1xf32, #tpu.memory_space<vmem>>, vector<64x1xf32>,
    return
  }
  func.func @transform_0(%arg0: i32) -> (i32, i32) {
    %c0_i32 = arith.constant 0 : i32
    %c0_i32_0 = arith.constant 0 : i32
    return %arg0, %c0_i32 : i32, i32
  }
  func.func @transform_1(%arg0: i32) -> (i32, i32) {
    %c0_i32 = arith.constant 0 : i32
    %c0_i32_0 = arith.constant 0 : i32
    %c0_i32_1 = arith.constant 0 : i32
    return %c0_i32, %c0_i32_0 : i32, i32
  }
  func.func @transform_2(%arg0: i32) -> (i32, i32) {
    %c0_i32 = arith.constant 0 : i32
    %c0_i32_0 = arith.constant 0 : i32
    %c0_i32_1 = arith.constant 0 : i32
    return %c0_i32, %c0_i32_0 : i32, i32
  }
  func.func @transform_3(%arg0: i32) -> i32 {
    %c0_i32 = arith.constant 0 : i32
    %c0_i32_0 = arith.constant 0 : i32
    return %c0_i32 : i32
  }
  func.func @transform_4(%arg0: i32) -> (i32, i32) {
    %c0_i32 = arith.constant 0 : i32
    %c0_i32_0 = arith.constant 0 : i32
    return %arg0, %c0_i32 : i32, i32
  }
  func.func @transform_5(%arg0: i32) -> (i32, i32) {
    %c0_i32 = arith.constant 0 : i32
    %c0_i32_0 = arith.constant 0 : i32
    return %arg0, %c0_i32 : i32, i32
  }
}

</mosaic_0001>

<bundles_post_ra>
// kernel: tpu_custom_call.1
= control target key start
LH: loop header
LB: loop body
LE: loop exit
PB: predicated region body
PF: predicated region fallthrough
CT: control target
= control target key end

     0   :  { %s688_s20 = smov 0   ;;  %s853_s0 = inlined_call_operand.vmem [shape: f32[256,32], index: 0, kind: input, shape index: {}]   ;;  %s854_s1 = inlined_call_operand.vmem [shape: f32[1,32], index: 1, kind: input, shape index: {}]   ;;  %s855_s2 = inlined_call_operand.vmem [shape: f32[1,32], index: 2, kind: input, shape index: {}]   ;;  %s856_s3 = inlined_call_operand.<no memory space> [shape: f32[1], index: 3, kind: input, shape index: {}]   ;;  %s857_s4 = inlined_call_operand.vmem [shape: f32[256,32], index: 4, kind: output, shape index: {0}]   ;;  %s858_s5 = inlined_call_operand.vmem [shape: f32[256,1], index: 5, kind: output, shape index: {1}]  }
   0x1   :  { %11 = sst [smem:[#allocation2]] %s856_s3 }
   0x2 LB: > { %s575_s21 = sadd.s32 4294967295, %s652_s20   ;;  %p579_p0 = scmp.ge.s32.totalorder %s652_s20, 1  ;;  %s652_s20 = sphi %s688_s20, %s17_s20  }
   0x3   : > { %p192_p1 = scmp.lt.s32.totalorder %s652_s20, 5 }
   0x5   : > { %p193_p2 = pnand %p579_p0, %p192_p1 }
   0x6   : > { %s580_s25 = sshll.u32 (!%p193_p2), %s575_s21, 3  ;;  %s253_s11 = sld [smem:[#allocation2]] (!%p193_p2) }
   0x7   : > { %196 = sbr.rel (%p193_p2) target bundleno = 551 (0x227), region = 36  ;;  %p226_p3 = scmp.lt.s32.totalorder (!%p193_p2), %s580_s25, 31 }
   0x8   : > { %s654_s12 = smov (!%p193_p2), 0.0  }
   0xc   : > { %v699_v0 = vld [vmem:[%s854_s1] sm:$0x1]  ;;  %vm255_vm0 = vcmask 253952   ;;  %s860_s25 = smov (!%p226_p3, %s580_s25), 31  ;;  %vm342_vm1 = vcmask 261120   ;;  %v762_v52 = vstv %s253_s11  ;;  %vm476_vm7 = vcmask 7168  }
   0xd   : > { %v704_v1 = vld [vmem:[%s855_s2] sm:$0x1]  ;;  %s712_s26 = sshll.u32 %s860_s25, 3 }
   0xe   : > { %v254_v2 = vmul.f32 %v704_v1, %v699_v0  ;;  %v292_v4 = vmul.f32 %v704_v1, %v704_v1  ;;  %v717_v13 = vld [vmem:[%s855_s2] ss:$0 sm:$0xff]  ;;  %s723_s6 = scalar_lea.vmem %s853_s0, %s712_s26  ;;  %s792_s23 = scalar_lea.vmem %s857_s4, %s712_s26 }
   0xf   : > { %v726_v14 = vld [vmem:[%s723_s6 + $0x8] sm:$0xff]  ;;  %v732_v17 = vld [vmem:[%s723_s6 + $0x18] sm:$0xff]  ;;  %v735_v18 = vld [vmem:[%s723_s6 + $0x10] sm:$0xff]  ;;  %s241_s27 = scalar_lea.vmem %s858_s5, %s712_s26 }
  0x10   : > { %v256_v3 = vsel %vm255_vm0, %v254_v2, 0.0  ;;  %v293_v5 = vsel %vm255_vm0, %v292_v4, 0.0  ;;  %v335_v15 = vmul.f32 %v717_v13, %v726_v14  ;;  %v337_v19 = vmul.f32 %v717_v13, %v732_v17  ;;  %v742_v21 = vld [vmem:[%s723_s6 + $0x30] sm:$0xff]  ;;  %v745_v22 = vld [vmem:[%s723_s6 + $0x28] sm:$0xff] }
  0x11   : > { %257 = vadd.xlane.f32.xlu0 %v256_v3  ;;  %v336_v20 = vmul.f32 %v717_v13, %v735_v18  ;;  %v340_v25 = vmul.f32 %v717_v13, %v742_v21  ;;  %v339_v26 = vmul.f32 %v717_v13, %v745_v22 }
  0x12   : > { %v346_v16 = vsel %vm342_vm1, %v335_v15, 0.0  ;;  %v352_v23 = vsel %vm342_vm1, %v337_v19, 0.0 }
  0x13   : > { %347 = vadd.xlane.f32.xlu2 %v346_v16  ;;  %v349_v24 = vsel %vm342_vm1, %v336_v20, 0.0  ;;  %v361_v27 = vsel %vm342_vm1, %v340_v25, 0.0  ;;  %v358_v28 = vsel %vm342_vm1, %v339_v26, 0.0  ;;  %v243_v25 = vld [vmem:[%s723_s6] sm:$0xff] }
  0x19   : > { %294 = vadd.xlane.f32.xlu0 %v293_v5 }
  0x1b   : > { %350 = vadd.xlane.f32.xlu2 %v349_v24 }
  0x21   : > { %353 = vadd.xlane.f32.xlu0 %v352_v23 }
  0x23   : > { %359 = vadd.xlane.f32.xlu2 %v358_v28 }
  0x29   : > { %362 = vadd.xlane.f32.xlu0 %v361_v27 }
  0x84   : > { %v258_v6 = vpop.xlane.xlu0 %257 }
  0x85   : > { %v259_v7 = vrot.slane %v258_v6, 4 }
  0x86   : > { %v348_v48 = vpop.xlane.xlu2 %347 }
  0x87   : > { %v260_v8 = vadd.f32 %v259_v7, %v258_v6  ;;  %v369_v54 = vadd.f32 %v762_v52, %v348_v48 }
  0x89   : > { %v261_v9 = vrot.slane %v260_v8, 2 }
  0x8b   : > { %v262_v10 = vadd.f32 %v261_v9, %v260_v8 }
  0x8c   : > { %v295_v32 = vpop.xlane.xlu0 %294 }
  0x8d   : > { %v263_v11 = vrot.slane %v262_v10, 1  ;;  %v296_v33 = vrot.slane %v295_v32, 4 }
  0x8e   : > { %v351_v50 = vpop.xlane.xlu2 %350 }
  0x8f   : > { %v264_v12 = vadd.f32 %v263_v11, %v262_v10  ;;  %v297_v34 = vadd.f32 %v296_v33, %v295_v32  ;;  %v370_v60 = vadd.f32 %v762_v52, %v351_v50  ;;  %v334_v33 = vmul.f32 %v717_v13, %v243_v25 }
  0x91   : > { %588 = vpush %v264_v12  ;;  %v298_v35 = vrot.slane %v297_v34, 2 }
  0x93   : > { %v299_v39 = vadd.f32 %v298_v35, %v297_v34 }
  0x94   : > { %v354_v49 = vpop.xlane.xlu0 %353 }
  0x95   : > { %v300_v42 = vrot.slane %v299_v39, 1  ;;  %v371_v57 = vadd.f32 %v762_v52, %v354_v49 }
  0x96   : > { %v360_v58 = vpop.xlane.xlu2 %359 }
  0x97   : > { %v301_v47 = vadd.f32 %v300_v42, %v299_v39  ;;  %v373_v3 = vadd.f32 %v762_v52, %v360_v58 }
  0x9c   : > { %v363_v56 = vpop.xlane.xlu0 %362 }
  0x9d   : > { %v374_v62 = vadd.f32 %v762_v52, %v363_v56 }
  0xc2   : > { %s755_s7 = spop %588 }
  0xc3   : > { %s269_s8 = sand.u32 2147483647, %s755_s7  ;;  %p267_p4 = scmp.ne.f32.partialorder %s755_s7, %s755_s7 }
  0xc4   : > { %s270_s9 = ssub.f32 0.0, %s269_s8  ;;  %s266_s13 = smax.f32 %s654_s12, %s755_s7 }
  0xc6   : > { %v271_v29 = vstv %s270_s9 }
  0xc7   : > { %v272_v30 = vmul.f32 1.442695, %v271_v29 }
  0xc9   : > { %608 = vpow2.f32 %v272_v30 }
  0xcf   : > { %v609_v31 = vpop.eup %608 }
  0xd0   : > { %590 = vpush %v609_v31 }
 0x101   : > { %s591_s10 = spop %590 }
 0x102   : > { %v275_v36 = vstv %s591_s10 }
 0x103   : > { %v276_v37 = vadd.f32 1.0, %v275_v36  ;;  %v279_v38 = vmul.f32 -0.5, %v275_v36  ;;  %v282_v41 = vand.u32 2147483647, %v275_v36 }
 0x105   : > { %610 = vlog2.f32 %v276_v37  ;;  %v280_v40 = vadd.f32 1.0, %v279_v38  ;;  %vm283_vm2 = vcmp.lt.f32.partialorder %v282_v41, 0.0004427343 }
 0x107   : > { %v281_v44 = vmul.f32 %v280_v40, %v275_v36  ;;  %v343_v36 = vsel %vm342_vm1, %v334_v33, 0.0 }
 0x10b   : > { %v611_v43 = vpop.eup %610 }
 0x10c   : > { %v278_v45 = vmul.f32 0.6931472, %v611_v43 }
 0x10e   : > { %v284_v46 = vsel %vm283_vm2, %v281_v44, %v278_v45 }
 0x10f   : > { %592 = vpush %v284_v46 }
 0x110   : > { %594 = vpush %v301_v47 }
 0x140   : > { %s593_s14 = spop %592 }
 0x141   : > { %s286_s15 = sadd.f32 %s593_s14, %s266_s13  ;;  %s595_s16 = spop %594 }
 0x142   : > { %v303_v51 = vstv %s595_s16 }
 0x143   : > { %s287_s17 = scalar_select %p267_p4, %s755_s7, %s286_s15  ;;  %612 = vrcp.f32 %v303_v51  ;;  %v315_v61 = vand.u32 2147483648, %v303_v51  ;;  %v313_v2 = vand.u32 2147483647, %v303_v51  ;;  %vm309_vm4 = vweird.f32 %v303_v51 }
 0x144   : > { %614 = vtanh.f32 %v369_v54 }
 0x145   : > { %s288_s18 = sadd.f32 -1.0, %s287_s17  ;;  %616 = vtanh.f32 %v371_v57  ;;  %v316_v6 = vor.u32 1.1754944e-38, %v315_v61  ;;  %vm314_vm6 = vcmp.eq.f32.partialorder %v313_v2, 8.507059e+37 }
 0x146   : > { %618 = vtanh.f32 %v370_v60 }
 0x147   : > { %s289_s19 = ssub.f32 %s288_s18, %s755_s7  ;;  %620 = vtanh.f32 %v374_v62 }
 0x148   : > { %622 = vtanh.f32 %v373_v3 }
 0x149   : > { %v613_v53 = vpop.eup %612  ;;  %v290_v4 = vstv %s289_s19 }
 0x14a   : > { %v305_v55 = vmul.f32 %v613_v53, %v303_v51  ;;  %vm310_vm3 = vweird.f32 %v613_v53  ;;  %v291_v7 = vmul.f32 %v290_v4, %v704_v1  ;;  %v771_v9 = vpop.eup %614 }
 0x14b   : > { %vm311_vm5 = vmor %vm309_vm4, %vm310_vm3  ;;  %v773_v12 = vpop.eup %616 }
 0x14c   : > { %v306_v59 = vsub.f32 1.0, %v305_v55  ;;  %v775_v15 = vpop.eup %618 }
 0x14d   : > { %v778_v19 = vpop.eup %620  ;;  %v413_v2 = vmul.f32 %v775_v15, %v775_v15 }
 0x14e   : > { %v307_v63 = vmul.f32 %v613_v53, %v306_v59  ;;  %v780_v20 = vpop.eup %622  ;;  %v417_v60 = vmul.f32 %v778_v19, %v778_v19 }
 0x14f   : > { %v416_v61 = vmul.f32 %v780_v20, %v780_v20 }
 0x150   : > { %v308_v5 = vadd.f32 %v613_v53, %v307_v63  ;;  %v414_v63 = vmul.f32 %v773_v12, %v773_v12 }
 0x152   : > { %v312_v8 = vsel %vm311_vm5, %v613_v53, %v308_v5  ;;  %v425_v5 = vsub.f32 1.0, %v417_v60 }
 0x153   : > { %v317_v10 = vsel %vm314_vm6, %v316_v6, %v312_v8  ;;  %v424_v6 = vsub.f32 1.0, %v416_v61 }
 0x154   : > { %v318_v11 = vmul.f32 %v317_v10, %v291_v7  ;;  %v422_v10 = vsub.f32 1.0, %v414_v63 }
 0x156   : > { %v319_v16 = vadd.f32 %v318_v11, %v699_v0  ;;  %v421_v11 = vsub.f32 1.0, %v413_v2 }
 0x158   : > { %v320_v23 = vmul.f32 %v319_v16, %v704_v1  ;;  %v385_v24 = vperm.slane %v319_v16, 0 }
 0x15a   : > { %v321_v26 = vsel %vm255_vm0, %v320_v23, 0.0  ;;  %v388_v27 = vmul.f32 %v771_v9, %v385_v24  ;;  %v389_v28 = vmul.f32 %v775_v15, %v385_v24  ;;  %v390_v29 = vmul.f32 %v773_v12, %v385_v24 }
 0x15b   : > { %322 = vadd.xlane.f32.xlu1 %v321_v26  ;;  %v392_v0 = vmul.f32 %v780_v20, %v385_v24  ;;  %v393_v1 = vmul.f32 %v778_v19, %v385_v24 }
 0x15c   : > { %v396_v30 = vadd.f32 %v388_v27, %v726_v14  ;;  %v397_v31 = vadd.f32 %v389_v28, %v735_v18  ;;  %v398_v32 = vadd.f32 %v390_v29, %v732_v17  ;;  %v247_v14 = vld [vmem:[%s723_s6 + $0x20] sm:$0xff] }
 0x15d   : > { %v400_v34 = vadd.f32 %v392_v0, %v745_v22  ;;  %v401_v35 = vadd.f32 %v393_v1, %v742_v21  ;;  %v338_v17 = vmul.f32 %v717_v13, %v247_v14  ;;  %v250_v22 = vld [vmem:[%s723_s6 + $0x38] sm:$0xff] }
 0x15e   : > { %404 = vst.msk [vmem:[%s792_s23 + $0x8] sm:$0xff] %vm342_vm1, %v396_v30  ;;  %v341_v21 = vmul.f32 %v717_v13, %v250_v22 }
 0x15f   : > { %405 = vst.msk [vmem:[%s792_s23 + $0x10] sm:$0xff] %vm342_vm1, %v397_v31  ;;  %v355_v18 = vsel %vm342_vm1, %v338_v17, 0.0 }
 0x160   : > { %406 = vst.msk [vmem:[%s792_s23 + $0x18] sm:$0xff] %vm342_vm1, %v398_v32  ;;  %v364_v37 = vsel %vm342_vm1, %v341_v21, 0.0 }
 0x161   : > { %408 = vst.msk [vmem:[%s792_s23 + $0x28] sm:$0xff] %vm342_vm1, %v400_v34 }
 0x162   : > { %409 = vst.msk [vmem:[%s792_s23 + $0x30] sm:$0xff] %vm342_vm1, %v401_v35 }
 0x163   : > { %344 = vadd.xlane.f32.xlu1 %v343_v36 }
 0x16b   : > { %356 = vadd.xlane.f32.xlu1 %v355_v18 }
 0x173   : > { %365 = vadd.xlane.f32.xlu1 %v364_v37 }
 0x1ce   : > { %v323_v38 = vpop.xlane.xlu1 %322 }
 0x1cf   : > { %v324_v39 = vrot.slane %v323_v38, 4 }
 0x1d1   : > { %v325_v40 = vadd.f32 %v324_v39, %v323_v38 }
 0x1d3   : > { %v326_v41 = vrot.slane %v325_v40, 2 }
 0x1d5   : > { %v327_v42 = vadd.f32 %v326_v41, %v325_v40 }
 0x1d6   : > { %v345_v43 = vpop.xlane.xlu1 %344 }
 0x1d7   : > { %v368_v44 = vadd.f32 %v762_v52, %v345_v43  ;;  %v328_v45 = vrot.slane %v327_v42, 1 }
 0x1d9   : > { %624 = vtanh.f32 %v368_v44  ;;  %v329_v46 = vadd.f32 %v328_v45, %v327_v42 }
 0x1db   : > { %596 = vpush %v329_v46 }
 0x1de   : > { %v357_v47 = vpop.xlane.xlu1 %356 }
 0x1df   : > { %v625_v48 = vpop.eup %624  ;;  %v372_v13 = vadd.f32 %v762_v52, %v357_v47 }
 0x1e0   : > { %v387_v49 = vmul.f32 %v625_v48, %v385_v24  ;;  %v411_v3 = vmul.f32 %v625_v48, %v625_v48 }
 0x1e1   : > { %626 = vtanh.f32 %v372_v13 }
 0x1e2   : > { %v395_v50 = vadd.f32 %v387_v49, %v243_v25  ;;  %v419_v16 = vsub.f32 1.0, %v411_v3 }
 0x1e4   : > { %403 = vst.msk [vmem:[%s792_s23] sm:$0xff] %vm342_vm1, %v395_v50 }
 0x1e6   : > { %v366_v51 = vpop.xlane.xlu1 %365 }
 0x1e7   : > { %v627_v53 = vpop.eup %626  ;;  %v375_v54 = vadd.f32 %v762_v52, %v366_v51  ;;  %v412_v52 = vmul.f32 %v771_v9, %v771_v9 }
 0x1e8   : > { %v391_v55 = vmul.f32 %v627_v53, %v385_v24  ;;  %v415_v4 = vmul.f32 %v627_v53, %v627_v53 }
 0x1e9   : > { %628 = vtanh.f32 %v375_v54  ;;  %v420_v8 = vsub.f32 1.0, %v412_v52 }
 0x1ea   : > { %v399_v56 = vadd.f32 %v391_v55, %v247_v14  ;;  %v423_v19 = vsub.f32 1.0, %v415_v4 }
 0x1ec   : > { %407 = vst.msk [vmem:[%s792_s23 + $0x20] sm:$0xff] %vm342_vm1, %v399_v56 }
 0x1ef   : > { %v629_v57 = vpop.eup %628 }
 0x1f0   : > { %v394_v58 = vmul.f32 %v629_v57, %v385_v24  ;;  %v418_v62 = vmul.f32 %v629_v57, %v629_v57 }
 0x1f2   : > { %v402_v59 = vadd.f32 %v394_v58, %v250_v22  ;;  %v426_v7 = vsub.f32 1.0, %v418_v62 }
 0x1f4   : > { %410 = vst.msk [vmem:[%s792_s23 + $0x38] sm:$0xff] %vm342_vm1, %v402_v59 }
 0x20c   : > { %s597_s3 = spop %596 }
 0x20d   : > { %v427_v20 = vstv %s597_s3 }
 0x20e   : > { %v428_v23 = vmul.f32 %v427_v20, %v419_v16  ;;  %v429_v9 = vmul.f32 %v427_v20, %v420_v8  ;;  %v430_v24 = vmul.f32 %v427_v20, %v421_v11  ;;  %v431_v25 = vmul.f32 %v427_v20, %v422_v10 }
 0x20f   : > { %v432_v12 = vmul.f32 %v427_v20, %v423_v19  ;;  %v433_v26 = vmul.f32 %v427_v20, %v424_v6  ;;  %v434_v27 = vmul.f32 %v427_v20, %v425_v5  ;;  %v435_v15 = vmul.f32 %v427_v20, %v426_v7 }
 0x210   : > { %v436_v28 = vadd.f32 1.0, %v428_v23  ;;  %v437_v29 = vadd.f32 1.0, %v429_v9  ;;  %v438_v0 = vadd.f32 1.0, %v430_v24  ;;  %v439_v1 = vadd.f32 1.0, %v431_v25 }
 0x211   : > { %v440_v30 = vadd.f32 1.0, %v432_v12  ;;  %v441_v31 = vadd.f32 1.0, %v433_v26  ;;  %v442_v32 = vadd.f32 1.0, %v434_v27  ;;  %v443_v33 = vadd.f32 1.0, %v435_v15 }
 0x212   : > { %v444_v34 = vand.u32 2147483647, %v436_v28  ;;  %v445_v35 = vand.u32 2147483647, %v437_v29  ;;  %v446_v36 = vand.u32 2147483647, %v438_v0 }
 0x213   : > { %v447_v14 = vand.u32 2147483647, %v439_v1  ;;  %v448_v17 = vand.u32 2147483647, %v440_v30  ;;  %v449_v18 = vand.u32 2147483647, %v441_v31 }
 0x214   : > { %v450_v22 = vand.u32 2147483647, %v442_v32  ;;  %v451_v21 = vand.u32 2147483647, %v443_v33  ;;  %v452_v37 = vadd.f32 1e-08, %v444_v34 }
 0x215   : > { %v453_v38 = vadd.f32 1e-08, %v445_v35  ;;  %v454_v39 = vadd.f32 1e-08, %v446_v36  ;;  %v455_v40 = vadd.f32 1e-08, %v447_v14 }
 0x216   : > { %v456_v41 = vadd.f32 1e-08, %v448_v17  ;;  %630 = vlog2.f32 %v452_v37  ;;  %v457_v42 = vadd.f32 1e-08, %v449_v18  ;;  %v458_v43 = vadd.f32 1e-08, %v450_v22 }
 0x217   : > { %632 = vlog2.f32 %v453_v38  ;;  %v459_v44 = vadd.f32 1e-08, %v451_v21 }
 0x218   : > { %634 = vlog2.f32 %v454_v39 }
 0x219   : > { %636 = vlog2.f32 %v455_v40 }
 0x21a   : > { %638 = vlog2.f32 %v456_v41 }
 0x21b   : > { %640 = vlog2.f32 %v457_v42 }
 0x21c   : > { %v631_v45 = vpop.eup %630  ;;  %642 = vlog2.f32 %v458_v43 }
 0x21d   : > { %v633_v46 = vpop.eup %632  ;;  %v461_v47 = vmul.f32 0.6931472, %v631_v45  ;;  %644 = vlog2.f32 %v459_v44 }
 0x21e   : > { %v635_v48 = vpop.eup %634  ;;  %v463_v13 = vmul.f32 0.6931472, %v633_v46 }
 0x21f   : > { %v637_v49 = vpop.eup %636  ;;  %v465_v50 = vmul.f32 0.6931472, %v635_v48  ;;  %477 = vst.msk [vmem:[%s241_s27] sm:$0xff] %vm476_vm7, %v461_v47 }
 0x220   : > { %v639_v51 = vpop.eup %638  ;;  %v467_v53 = vmul.f32 0.6931472, %v637_v49  ;;  %478 = vst.msk [vmem:[%s241_s27 + $0x8] sm:$0xff] %vm476_vm7, %v463_v13 }
 0x221   : > { %v641_v54 = vpop.eup %640  ;;  %v469_v55 = vmul.f32 0.6931472, %v639_v51  ;;  %479 = vst.msk [vmem:[%s241_s27 + $0x10] sm:$0xff] %vm476_vm7, %v465_v50 }
 0x222   : > { %v643_v56 = vpop.eup %642  ;;  %v471_v57 = vmul.f32 0.6931472, %v641_v54  ;;  %480 = vst.msk [vmem:[%s241_s27 + $0x18] sm:$0xff] %vm476_vm7, %v467_v53 }
 0x223   : > { %v645_v58 = vpop.eup %644  ;;  %v473_v59 = vmul.f32 0.6931472, %v643_v56  ;;  %481 = vst.msk [vmem:[%s241_s27 + $0x20] sm:$0xff] %vm476_vm7, %v469_v55 }
 0x224   : > { %v475_v60 = vmul.f32 0.6931472, %v645_v58  ;;  %482 = vst.msk [vmem:[%s241_s27 + $0x28] sm:$0xff] %vm476_vm7, %v471_v57 }
 0x225   : > { %483 = vst.msk [vmem:[%s241_s27 + $0x30] sm:$0xff] %vm476_vm7, %v473_v59 }
 0x226   : > { %484 = vst.msk [vmem:[%s241_s27 + $0x38] sm:$0xff] %vm476_vm7, %v475_v60 }
 0x227 PF: > { %s17_s20 = sadd.s32 1, %s652_s20  }
 0x228   : > { %p14_p5 = scmp.ge.s32.totalorder %s17_s20, 6  }
 0x22a   :  { %16 = sbr.rel (!%p14_p5) target bundleno = 2 (0x2), region = 78 }

</bundles_post_ra>
